<compile_context>
chip_gen: v7x
topology: tpu7x:2x2x1
jax: 0.10.0
libtpu: 0.0.40
codegen_flags: <defaults>
</compile_context>

<pallas_src>
import jax
import jax.numpy as jnp
from jax.experimental import pallas as pl
from jax.experimental.pallas import tpu as pltpu


def _round_up(x, m):
    return ((x + m - 1) // m) * m


def _log1p_stable(t):
    """Accurate log(1 + t) for t in [0, 1] with only guaranteed-lowerable ops.

    Goldberg correction: log1p(t) = log(w) * t / (w - 1) with w = fl(1 + t);
    when w rounds to exactly 1.0, log1p(t) ~= t.  The denominator is clamped
    so the unselected branch never contains Inf/NaN.
    """
    w = 1.0 + t
    denom = jnp.where(w == 1.0, 1.0, w - 1.0)
    corrected = jnp.log(w) * (t / denom)
    return jnp.where(w == 1.0, t, corrected)


def _default_vmem_budget():
    """Half of physical VMEM: 32 MiB on v7x, 64 MiB on v5e/v6e."""
    cap = None
    try:
        cap = int(pltpu.get_tpu_info().vmem_capacity_bytes)
    except Exception:
        cap = None
    if not cap or cap <= 0:
        cap = 64 * 1024 * 1024          # conservative fallback (v7x physical)
    return min(cap // 2, 64 * 1024 * 1024)


def _pick_tile_t(*, n_mel, T, T_dec, T_enc, t_gate, mel_isz, al_isz, gate_isz,
                 acc_mel_rows, max_tile_t, vmem_budget):
    """Largest multiple-of-128 frame tile that keeps the resident VMEM
    (double-buffered inputs + accumulators + headroom) within the budget."""
    t_longest = max(T, T_dec)
    cap = _round_up(t_longest, 128)
    if max_tile_t is not None:
        cap = min(cap, max(128, (int(max_tile_t) // 128) * 128))
    fixed = (2 * 2 * t_gate * gate_isz      # gate out + target, double-buffered
             + 2 * 128 * 4                  # output slab, double-buffered
             + 8 * T_enc * 4                # running-max accumulator
             + 2 * 1024 * 1024)             # headroom (compiler-internal scratch)
    per_frame = (2 * 3 * n_mel * mel_isz    # 3 mel streams, double-buffered
                 + 2 * T_enc * al_isz       # alignment, double-buffered
                 + acc_mel_rows * 4)        # mel SSE accumulator
    fit = (vmem_budget - fixed) // per_frame
    tile_t = (max(int(fit), 128) // 128) * 128
    return max(128, min(tile_t, cap))


def _make_kernel(*, n_mel, T, T_dec, T_enc, tile_t, n_t, n_t_mel, n_t_align,
                 use_mel_fold):
    def kernel(mel_out_ref, mel_post_ref, mel_tgt_ref,
               gate_out_ref, gate_tgt_ref, align_ref,
               out_ref, acc_mel_ref, acc_max_ref):
        t = pl.program_id(1)

        # ---- init accumulators at the first frame tile of this batch elem ----
        @pl.when(t == 0)
        def _init():
            acc_mel_ref[...] = jnp.zeros(acc_mel_ref.shape, jnp.float32)
            acc_max_ref[...] = jnp.full(acc_max_ref.shape, -jnp.inf, jnp.float32)

        # ---- per-tile mel SSE (VPU adds only; ragged tail masked in-kernel) --
        def _mel_step():
            mo = mel_out_ref[0].astype(jnp.float32)     # (n_mel, tile_t)
            mp = mel_post_ref[0].astype(jnp.float32)
            mt = mel_tgt_ref[0].astype(jnp.float32)
            d1 = mo - mt
            d2 = mp - mt
            sq = d1 * d1 + d2 * d2
            if T % tile_t != 0:
                col = jax.lax.broadcasted_iota(jnp.int32, sq.shape, 1) + t * tile_t
                sq = jnp.where(col < T, sq, 0.0)
            if use_mel_fold:
                # tile-grid-safe sublane fold: (n_mel, tile_t) -> (8, tile_t)
                sq = sq.reshape(n_mel // 8, 8, tile_t).sum(axis=0)
            acc_mel_ref[...] += sq

        # ---- per-tile running max over decoder frames (sublane fold only) ----
        def _align_step():
            a = align_ref[0].astype(jnp.float32)        # (tile_t, T_enc)
            if T_dec % tile_t != 0:
                row = jax.lax.broadcasted_iota(jnp.int32, a.shape, 0) + t * tile_t
                a = jnp.where(row < T_dec, a, -jnp.inf)
            a = a.reshape(tile_t // 8, 8, T_enc).max(axis=0)
            acc_max_ref[...] = jnp.maximum(acc_max_ref[...], a)

        if n_t_mel == n_t:
            _mel_step()
        else:
            pl.when(t < n_t_mel)(_mel_step)
        if n_t_align == n_t:
            _align_step()
        else:
            pl.when(t < n_t_align)(_align_step)

        # ---- finalize once per batch element ---------------------------------
        @pl.when(t == n_t - 1)
        def _finalize():
            mel_sse = jnp.sum(acc_mel_ref[...])

            # gate BCE-with-logits (stable): max(x,0) - x*z + log1p(exp(-|x|)).
            x = gate_out_ref[0].astype(jnp.float32)     # (1, t_gate)
            z = gate_tgt_ref[0].astype(jnp.float32)
            bce = jnp.maximum(x, 0.0) - x * z + _log1p_stable(jnp.exp(-jnp.abs(x)))
            gate_sum = jnp.sum(bce)

            # final 8->1 sublane reduction of the running max, then lane sum.
            diag_sum = jnp.sum(jnp.max(acc_max_ref[...], axis=0, keepdims=True))

            # Lane-padded, unmasked full-row store of the three partial sums.
            lane = jax.lax.broadcasted_iota(jnp.int32, out_ref.shape, 2)
            out_ref[...] = (jnp.where(lane == 0, mel_sse, 0.0)
                            + jnp.where(lane == 1, gate_sum, 0.0)
                            + jnp.where(lane == 2, diag_sum, 0.0))

    return kernel


def dtc_loss(mel_out, mel_out_post_net, gate_out, alignment,
             mel_target, gate_target, *, max_tile_t=2048, vmem_budget_bytes=None):
    """Pallas version of dtcLoss.forward (no reverse encoder, no STFT).

    mel_* : (B, n_mel, T)    gate_* : (B, T_gate)    alignment : (B, T_dec, T_enc)
    """
    B, n_mel, T = mel_out.shape
    Ba, T_dec, T_enc = alignment.shape
    assert Ba == B and mel_out_post_net.shape == mel_out.shape
    assert mel_target.shape == mel_out.shape
    assert gate_out.shape[0] == B and gate_out.size % B == 0
    assert gate_target.size == gate_out.size

    # gate tensors reshaped to (B, 1, T_gate): the block is full-extent in its
    # last two dims and has a constant index_map (fetched once per batch elem).
    n_gate = gate_out.size
    t_gate = n_gate // B
    gate_out_r = gate_out.reshape(B, 1, t_gate)
    gate_tgt_r = gate_target.reshape(B, 1, t_gate)

    mel_isz = mel_out.dtype.itemsize
    al_isz = alignment.dtype.itemsize
    gate_isz = gate_out.dtype.itemsize

    use_mel_fold = (n_mel % 8 == 0) and (n_mel > 8)
    acc_mel_rows = 8 if use_mel_fold else n_mel

    if vmem_budget_bytes is None:
        vmem_budget_bytes = _default_vmem_budget()

    tile_t = _pick_tile_t(
        n_mel=n_mel, T=T, T_dec=T_dec, T_enc=T_enc, t_gate=t_gate,
        mel_isz=mel_isz, al_isz=al_isz, gate_isz=gate_isz,
        acc_mel_rows=acc_mel_rows, max_tile_t=max_tile_t,
        vmem_budget=vmem_budget_bytes)

    # decoupled frame-tile counts for the two streams (no padded DMA).
    n_t_mel = pl.cdiv(T, tile_t)
    n_t_align = pl.cdiv(T_dec, tile_t)
    n_t = max(n_t_mel, n_t_align)

    if n_t_mel == n_t:
        mel_idx = lambda b, t: (b, 0, t)
    else:
        last_mel = n_t_mel - 1
        mel_idx = lambda b, t: (b, 0, jnp.minimum(t, last_mel))
    if n_t_align == n_t:
        align_idx = lambda b, t: (b, t, 0)
    else:
        last_al = n_t_align - 1
        align_idx = lambda b, t: (b, jnp.minimum(t, last_al), 0)

    mel_spec = pl.BlockSpec((1, n_mel, tile_t), mel_idx)
    gate_spec = pl.BlockSpec((1, 1, t_gate), lambda b, t: (b, 0, 0))
    align_spec = pl.BlockSpec((1, tile_t, T_enc), align_idx)
    out_spec = pl.BlockSpec((1, 1, 128), lambda b, t: (b, 0, 0))

    grid_spec = pltpu.PrefetchScalarGridSpec(
        num_scalar_prefetch=0,
        grid=(B, n_t),
        in_specs=[mel_spec, mel_spec, mel_spec, gate_spec, gate_spec, align_spec],
        out_specs=out_spec,
        scratch_shapes=[
            pltpu.VMEM((acc_mel_rows, tile_t), jnp.float32),  # mel SSE accum
            pltpu.VMEM((8, T_enc), jnp.float32),              # running max
        ],
    )

    bytes_in = (3 * B * n_mel * T) * mel_isz \
        + (B * T_dec * T_enc) * al_isz \
        + 2 * n_gate * gate_isz
    bytes_out = B * 128 * 4
    cost = pl.CostEstimate(
        flops=int(7 * B * n_mel * T + 2 * B * T_dec * T_enc + 12 * n_gate),
        transcendentals=int(2 * n_gate),
        bytes_accessed=int(bytes_in + bytes_out),
    )

    kernel = _make_kernel(
        n_mel=n_mel, T=T, T_dec=T_dec, T_enc=T_enc, tile_t=tile_t, n_t=n_t,
        n_t_mel=n_t_mel, n_t_align=n_t_align, use_mel_fold=use_mel_fold)

    partials = pl.pallas_call(
        kernel,
        out_shape=jax.ShapeDtypeStruct((B, 1, 128), jnp.float32),
        grid_spec=grid_spec,
        compiler_params=pltpu.CompilerParams(
            dimension_semantics=("parallel", "arbitrary"),
            vmem_limit_bytes=int(vmem_budget_bytes),
        ),
        cost_estimate=cost,
    )(mel_out, mel_out_post_net, mel_target, gate_out_r, gate_tgt_r, alignment)

    # ---- normalise with GLOBAL element counts ---------------------------------
    mel_loss = jnp.sum(partials[:, 0, 0]) / float(B * n_mel * T)
    gate_loss = jnp.sum(partials[:, 0, 1]) / float(n_gate)
    diag = jnp.sum(partials[:, 0, 2]) / float(B * T_enc)
    total = mel_loss + gate_loss
    return {
        "loss": total,
        "mel_loss": mel_loss,
        "gate_loss": gate_loss,
        "diagonal_score": diag,
    }


def _dtc_loss_ref(mel_out, mel_out_post_net, gate_out, alignment,
                  mel_target, gate_target):
    """Pure-JAX reference mirroring the PyTorch math."""
    mse1 = jnp.mean((mel_out - mel_target) ** 2)
    mse2 = jnp.mean((mel_out_post_net - mel_target) ** 2)
    mel_loss = mse1 + mse2
    x = gate_out.reshape(-1)
    z = gate_target.reshape(-1)
    bce = jnp.maximum(x, 0.0) - x * z + jnp.log1p(jnp.exp(-jnp.abs(x)))
    gate_loss = jnp.mean(bce)
    diag = jnp.mean(jnp.max(alignment, axis=1))
    return mel_loss, gate_loss, diag, mel_loss + gate_loss


if __name__ == "__main__":
    key = jax.random.PRNGKey(0)
    k = jax.random.split(key, 6)

    B, NMEL, T = 2, 16, 200       # batch, mel channels, mel frames
    T_DEC, T_ENC = 300, 128       # alignment: decoder frames (!= T) x encoder steps

    mel_out = jax.random.normal(k[0], (B, NMEL, T), dtype=jnp.float32)
    mel_out_post_net = jax.random.normal(k[1], (B, NMEL, T), dtype=jnp.float32)
    mel_target = jax.random.normal(k[2], (B, NMEL, T), dtype=jnp.float32)

    gate_out = 4.0 * jax.random.normal(k[3], (B, T), dtype=jnp.float32)
    gate_target = (jax.random.uniform(k[4], (B, T)) > 0.5).astype(jnp.float32)

    # softmax over encoder axis so alignment rows sum to 1 (like attention)
    align_logits = jax.random.normal(k[5], (B, T_DEC, T_ENC), dtype=jnp.float32)
    alignment = jax.nn.softmax(align_logits, axis=-1)

    # small tile so the test exercises multi-step accumulation, ragged last
    # tiles on both streams and the decoupled (T != T_dec) frame axes.
    out = dtc_loss(mel_out, mel_out_post_net, gate_out, alignment,
                   mel_target, gate_target, max_tile_t=128)
    jax.block_until_ready(out)

    ref_mel, ref_gate, ref_diag, ref_total = _dtc_loss_ref(
        mel_out, mel_out_post_net, gate_out, alignment, mel_target, gate_target)

    assert jnp.allclose(out["mel_loss"], ref_mel, rtol=1e-5, atol=1e-5)
    assert jnp.allclose(out["gate_loss"], ref_gate, rtol=1e-5, atol=1e-5)
    assert jnp.allclose(out["diagonal_score"], ref_diag, rtol=1e-5, atol=1e-5)
    assert jnp.allclose(out["loss"], ref_total, rtol=1e-5, atol=1e-5)

    print("KERNEL_OK")
</pallas_src>

<mosaic_0001>
module attributes {stable_mosaic.version = 11 : i64} {
  func.func @kernel(%arg0: i32, %arg1: i32, %arg2: memref<1x16x128xf32, #tpu.memory_space<vmem>>, %arg3: memref<1x16x128xf32, #tpu.memory_space<vmem>>, %arg4: memref<1x16x128xf32, #tpu.memory_space<vmem>>, %arg5: memref<1x1x200xf32, #tpu.memory_space<vmem>>, %arg6: memref<1x1x200xf32, #tpu.memory_space<vmem>>, %arg7: memref<1x128x128xf32, #tpu.memory_space<vmem>>, %arg8: memref<1x1x128xf32, #tpu.memory_space<vmem>>, %arg9: memref<8x128xf32, #tpu.memory_space<vmem>>, %arg10: memref<8x128xf32, #tpu.memory_space<vmem>>) attributes {dimension_semantics = [#tpu.dimension_semantics<parallel>, #tpu.dimension_semantics<arbitrary>], iteration_bounds = array<i64: 2, 3>, scalar_prefetch = 0 : i64, scratch_operands = 2 : i64, tpu.core_type = #tpu.core_type<tc>, window_params = [{transform_indices = @transform_0, window_bounds = array<i64: 1, 16, 128>}, {transform_indices = @transform_1, window_bounds = array<i64: 1, 16, 128>}, {transform_indices = @transform_2, window_bounds = array<i64: 1, 16, 128>}, {transform_indices = @transform_3, window_bounds = array<i64: 1, 1, 200>}, {transform_indices = @transform_4, window_bounds = array<i64: 1, 1, 200>}, {transform_indices = @transform_5, window_bounds = array<i64: 1, 128, 128>}, {transform_indices = @transform_6, window_bounds = array<i64: 1, 1, 128>}]} {
    %c0_i32 = arith.constant 0 : i32
    %0 = arith.cmpi eq, %arg1, %c0_i32 : i32
    %1 = arith.extui %0 : i1 to i32
    %c0_i32_0 = arith.constant 0 : i32
    %2 = arith.cmpi ne, %1, %c0_i32_0 : i32
    scf.if %2 {
      %cst_11 = arith.constant 0.000000e+00 : f32
      %24 = vector.broadcast %cst_11 : f32 to vector<8x128xf32>
      %c0_12 = arith.constant 0 : index
      %c0_13 = arith.constant 0 : index
      %25 = vector.load %arg9[%c0_12, %c0_13] : memref<8x128xf32, #tpu.memory_space<vmem>>, vector<8x128xf32>
      tpu.vector_store %arg9[%c0_12, %c0_13], %24 {strides = array<i32>} : memref<8x128xf32, #tpu.memory_space<vmem>>, vector<8x128xf32>,
      %cst_14 = arith.constant 0xFF800000 : f32
      %26 = vector.broadcast %cst_14 : f32 to vector<8x128xf32>
      %c0_15 = arith.constant 0 : index
      %c0_16 = arith.constant 0 : index
      %27 = vector.load %arg10[%c0_15, %c0_16] : memref<8x128xf32, #tpu.memory_space<vmem>>, vector<8x128xf32>
      tpu.vector_store %arg10[%c0_15, %c0_16], %26 {strides = array<i32>} : memref<8x128xf32, #tpu.memory_space<vmem>>, vector<8x128xf32>,
    } else {
    }
    %c2_i32 = arith.constant 2 : i32
    %3 = arith.cmpi slt, %arg1, %c2_i32 : i32
    %4 = arith.extui %3 : i1 to i32
    %c0_i32_1 = arith.constant 0 : i32
    %5 = arith.cmpi ne, %4, %c0_i32_1 : i32
    scf.if %5 {
      %c0_11 = arith.constant 0 : index
      %c0_12 = arith.constant 0 : index
      %c0_13 = arith.constant 0 : index
      %24 = vector.load %arg2[%c0_11, %c0_12, %c0_13] : memref<1x16x128xf32, #tpu.memory_space<vmem>>, vector<1x16x128xf32>
      %25 = vector.shape_cast %24 : vector<1x16x128xf32> to vector<16x128xf32>
      %c0_14 = arith.constant 0 : index
      %c0_15 = arith.constant 0 : index
      %c0_16 = arith.constant 0 : index
      %26 = vector.load %arg3[%c0_14, %c0_15, %c0_16] : memref<1x16x128xf32, #tpu.memory_space<vmem>>, vector<1x16x128xf32>
      %27 = vector.shape_cast %26 : vector<1x16x128xf32> to vector<16x128xf32>
      %c0_17 = arith.constant 0 : index
      %c0_18 = arith.constant 0 : index
      %c0_19 = arith.constant 0 : index
      %28 = vector.load %arg4[%c0_17, %c0_18, %c0_19] : memref<1x16x128xf32, #tpu.memory_space<vmem>>, vector<1x16x128xf32>
      %29 = vector.shape_cast %28 : vector<1x16x128xf32> to vector<16x128xf32>
      %30 = arith.subf %25, %29 : vector<16x128xf32>
      %31 = arith.subf %27, %29 : vector<16x128xf32>
      %32 = arith.mulf %30, %30 : vector<16x128xf32>
      %33 = arith.mulf %31, %31 : vector<16x128xf32>
      %34 = arith.addf %32, %33 : vector<16x128xf32>
      %35 = tpu.iota {dimensions = array<i32: 1>} : vector<16x128xi32>
      %c128_i32_20 = arith.constant 128 : i32
      %36 = arith.muli %arg1, %c128_i32_20 : i32
      %37 = vector.broadcast %36 : i32 to vector<16x128xi32>
      %38 = arith.addi %35, %37 : vector<16x128xi32>
      %c200_i32 = arith.constant 200 : i32
      %39 = vector.broadcast %c200_i32 : i32 to vector<16x128xi32>
      %40 = arith.cmpi slt, %38, %39 : vector<16x128xi32>
      %cst_21 = arith.constant 0.000000e+00 : f32
      %41 = vector.broadcast %cst_21 : f32 to vector<16x128xf32>
      %42 = arith.select %40, %34, %41 : vector<16x128xi1>, vector<16x128xf32>
      %43 = vector.shape_cast %42 : vector<16x128xf32> to vector<2x8x128xf32>
      %cst_22 = arith.constant dense<0.000000e+00> : vector<8x128xf32>
      %44 = vector.multi_reduction <add>, %43, %cst_22 [0] : vector<2x8x128xf32> to vector<8x128xf32>
      %c0_23 = arith.constant 0 : index
      %c0_24 = arith.constant 0 : index
      %45 = vector.load %arg9[%c0_23, %c0_24] : memref<8x128xf32, #tpu.memory_space<vmem>>, vector<8x128xf32>
      %46 = arith.addf %45, %44 : vector<8x128xf32>
      %c0_25 = arith.constant 0 : index
      %c0_26 = arith.constant 0 : index
      %47 = vector.load %arg9[%c0_25, %c0_26] : memref<8x128xf32, #tpu.memory_space<vmem>>, vector<8x128xf32>
      tpu.vector_store %arg9[%c0_25, %c0_26], %46 {strides = array<i32>} : memref<8x128xf32, #tpu.memory_space<vmem>>, vector<8x128xf32>,
    } else {
    }
    %c0 = arith.constant 0 : index
    %c0_2 = arith.constant 0 : index
    %c0_3 = arith.constant 0 : index
    %6 = vector.load %arg7[%c0, %c0_2, %c0_3] : memref<1x128x128xf32, #tpu.memory_space<vmem>>, vector<1x128x128xf32>
    %7 = vector.shape_cast %6 : vector<1x128x128xf32> to vector<128x128xf32>
    %8 = tpu.iota {dimensions = array<i32: 0>} : vector<128x128xi32>
    %c128_i32 = arith.constant 128 : i32
    %9 = arith.muli %arg1, %c128_i32 : i32
    %10 = vector.broadcast %9 : i32 to vector<128x128xi32>
    %11 = arith.addi %8, %10 : vector<128x128xi32>
    %c300_i32 = arith.constant 300 : i32
    %12 = vector.broadcast %c300_i32 : i32 to vector<128x128xi32>
    %13 = arith.cmpi slt, %11, %12 : vector<128x128xi32>
    %cst = arith.constant 0xFF800000 : f32
    %14 = vector.broadcast %cst : f32 to vector<128x128xf32>
    %15 = arith.select %13, %7, %14 : vector<128x128xi1>, vector<128x128xf32>
    %16 = vector.shape_cast %15 : vector<128x128xf32> to vector<16x8x128xf32>
    %cst_4 = arith.constant dense<0xFF800000> : vector<8x128xf32>
    %17 = vector.multi_reduction <maximumf>, %16, %cst_4 [0] : vector<16x8x128xf32> to vector<8x128xf32>
    %c0_5 = arith.constant 0 : index
    %c0_6 = arith.constant 0 : index
    %18 = vector.load %arg10[%c0_5, %c0_6] : memref<8x128xf32, #tpu.memory_space<vmem>>, vector<8x128xf32>
    %19 = arith.maximumf %18, %17 : vector<8x128xf32>
    %c0_7 = arith.constant 0 : index
    %c0_8 = arith.constant 0 : index
    %20 = vector.load %arg10[%c0_7, %c0_8] : memref<8x128xf32, #tpu.memory_space<vmem>>, vector<8x128xf32>
    tpu.vector_store %arg10[%c0_7, %c0_8], %19 {strides = array<i32>} : memref<8x128xf32, #tpu.memory_space<vmem>>, vector<8x128xf32>,
    %c2_i32_9 = arith.constant 2 : i32
    %21 = arith.cmpi eq, %arg1, %c2_i32_9 : i32
    %22 = arith.extui %21 : i1 to i32
    %c0_i32_10 = arith.constant 0 : i32
    %23 = arith.cmpi ne, %22, %c0_i32_10 : i32
    scf.if %23 {
      %c0_11 = arith.constant 0 : index
      %c0_12 = arith.constant 0 : index
      %24 = vector.load %arg9[%c0_11, %c0_12] : memref<8x128xf32, #tpu.memory_space<vmem>>, vector<8x128xf32>
      %25 = vector.shape_cast %24 : vector<8x128xf32> to vector<1x8x128xf32>
      %cst_13 = arith.constant dense<0.000000e+00> : vector<1xf32>
      %26 = vector.multi_reduction <add>, %25, %cst_13 [1, 2] : vector<1x8x128xf32> to vector<1xf32>
      %27 = vector.shape_cast %26 : vector<1xf32> to vector<1x1x1xf32>
      %28 = vector.extract %27[0, 0, 0] : f32 from vector<1x1x1xf32>
      %c0_14 = arith.constant 0 : index
      %c0_15 = arith.constant 0 : index
      %c0_16 = arith.constant 0 : index
      %29 = vector.load %arg5[%c0_14, %c0_15, %c0_16] : memref<1x1x200xf32, #tpu.memory_space<vmem>>, vector<1x1x200xf32>
      %30 = vector.shape_cast %29 : vector<1x1x200xf32> to vector<1x200xf32>
      %c0_17 = arith.constant 0 : index
      %c0_18 = arith.constant 0 : index
      %c0_19 = arith.constant 0 : index
      %31 = vector.load %arg6[%c0_17, %c0_18, %c0_19] : memref<1x1x200xf32, #tpu.memory_space<vmem>>, vector<1x1x200xf32>
      %32 = vector.shape_cast %31 : vector<1x1x200xf32> to vector<1x200xf32>
      %cst_20 = arith.constant 0.000000e+00 : f32
      %33 = vector.broadcast %cst_20 : f32 to vector<1x200xf32>
      %34 = arith.maximumf %30, %33 : vector<1x200xf32>
      %35 = arith.mulf %30, %32 : vector<1x200xf32>
      %36 = arith.subf %34, %35 : vector<1x200xf32>
      %37 = math.absf %30 : vector<1x200xf32>
      %cst_21 = arith.constant 0.000000e+00 : f32
      %38 = vector.broadcast %cst_21 : f32 to vector<1x200xf32>
      %39 = arith.subf %38, %37 : vector<1x200xf32>
      %40 = math.exp %39 : vector<1x200xf32>
      %cst_22 = arith.constant 1.000000e+00 : f32
      %41 = vector.broadcast %cst_22 : f32 to vector<1x200xf32>
      %42 = arith.addf %41, %40 : vector<1x200xf32>
      %cst_23 = arith.constant 1.000000e+00 : f32
      %43 = vector.broadcast %cst_23 : f32 to vector<1x200xf32>
      %44 = arith.cmpf oeq, %42, %43 : vector<1x200xf32>
      %cst_24 = arith.constant 1.000000e+00 : f32
      %45 = vector.broadcast %cst_24 : f32 to vector<1x200xf32>
      %46 = arith.subf %42, %45 : vector<1x200xf32>
      %cst_25 = arith.constant 1.000000e+00 : f32
      %47 = vector.broadcast %cst_25 : f32 to vector<1x200xf32>
      %48 = arith.select %44, %47, %46 : vector<1x200xi1>, vector<1x200xf32>
      %49 = math.log %42 : vector<1x200xf32>
      %50 = arith.divf %40, %48 : vector<1x200xf32>
      %51 = arith.mulf %49, %50 : vector<1x200xf32>
      %cst_26 = arith.constant 1.000000e+00 : f32
      %52 = vector.broadcast %cst_26 : f32 to vector<1x200xf32>
      %53 = arith.cmpf oeq, %42, %52 : vector<1x200xf32>
      %54 = arith.select %53, %40, %51 : vector<1x200xi1>, vector<1x200xf32>
      %55 = arith.addf %36, %54 : vector<1x200xf32>
      %56 = vector.shape_cast %55 : vector<1x200xf32> to vector<1x1x200xf32>
      %cst_27 = arith.constant dense<0.000000e+00> : vector<1xf32>
      %57 = vector.multi_reduction <add>, %56, %cst_27 [1, 2] : vector<1x1x200xf32> to vector<1xf32>
      %58 = vector.shape_cast %57 : vector<1xf32> to vector<1x1x1xf32>
      %59 = vector.extract %58[0, 0, 0] : f32 from vector<1x1x1xf32>
      %c0_28 = arith.constant 0 : index
      %c0_29 = arith.constant 0 : index
      %60 = vector.load %arg10[%c0_28, %c0_29] : memref<8x128xf32, #tpu.memory_space<vmem>>, vector<8x128xf32>
      %cst_30 = arith.constant dense<0xFF800000> : vector<128xf32>
      %61 = vector.multi_reduction <maximumf>, %60, %cst_30 [0] : vector<8x128xf32> to vector<128xf32>
      %62 = vector.shape_cast %61 : vector<128xf32> to vector<1x128xf32>
      %63 = vector.shape_cast %62 : vector<1x128xf32> to vector<1x1x128xf32>
      %cst_31 = arith.constant dense<0.000000e+00> : vector<1xf32>
      %64 = vector.multi_reduction <add>, %63, %cst_31 [1, 2] : vector<1x1x128xf32> to vector<1xf32>
      %65 = vector.shape_cast %64 : vector<1xf32> to vector<1x1x1xf32>
      %66 = vector.extract %65[0, 0, 0] : f32 from vector<1x1x1xf32>
      %67 = tpu.iota {dimensions = array<i32: 2>} : vector<1x1x128xi32>
      %c0_i32_32 = arith.constant 0 : i32
      %68 = vector.broadcast %c0_i32_32 : i32 to vector<1x1x128xi32>
      %69 = arith.cmpi eq, %67, %68 : vector<1x1x128xi32>
      %cst_33 = arith.constant 0.000000e+00 : f32
      %70 = vector.broadcast %28 : f32 to vector<1x1x128xf32>
      %71 = vector.broadcast %cst_33 : f32 to vector<1x1x128xf32>
      %72 = arith.select %69, %70, %71 : vector<1x1x128xi1>, vector<1x1x128xf32>
      %c1_i32 = arith.constant 1 : i32
      %73 = vector.broadcast %c1_i32 : i32 to vector<1x1x128xi32>
      %74 = arith.cmpi eq, %67, %73 : vector<1x1x128xi32>
      %cst_34 = arith.constant 0.000000e+00 : f32
      %75 = vector.broadcast %59 : f32 to vector<1x1x128xf32>
      %76 = vector.broadcast %cst_34 : f32 to vector<1x1x128xf32>
      %77 = arith.select %74, %75, %76 : vector<1x1x128xi1>, vector<1x1x128xf32>
      %78 = arith.addf %72, %77 : vector<1x1x128xf32>
      %c2_i32_35 = arith.constant 2 : i32
      %79 = vector.broadcast %c2_i32_35 : i32 to vector<1x1x128xi32>
      %80 = arith.cmpi eq, %67, %79 : vector<1x1x128xi32>
      %cst_36 = arith.constant 0.000000e+00 : f32
      %81 = vector.broadcast %66 : f32 to vector<1x1x128xf32>
      %82 = vector.broadcast %cst_36 : f32 to vector<1x1x128xf32>
      %83 = arith.select %80, %81, %82 : vector<1x1x128xi1>, vector<1x1x128xf32>
      %84 = arith.addf %78, %83 : vector<1x1x128xf32>
      %c0_37 = arith.constant 0 : index
      %c0_38 = arith.constant 0 : index
      %c0_39 = arith.constant 0 : index
      %85 = vector.load %arg8[%c0_37, %c0_38, %c0_39] : memref<1x1x128xf32, #tpu.memory_space<vmem>>, vector<1x1x128xf32>
      tpu.vector_store %arg8[%c0_37, %c0_38, %c0_39], %84 {strides = array<i32>} : memref<1x1x128xf32, #tpu.memory_space<vmem>>, vector<1x1x128xf32>,
    } else {
    }
    return
  }
  func.func @transform_0(%arg0: i32, %arg1: i32) -> (i32, i32, i32) {
    %c1_i32 = arith.constant 1 : i32
    %0 = arith.minsi %arg1, %c1_i32 : i32
    %c0_i32 = arith.constant 0 : i32
    %c0_i32_0 = arith.constant 0 : i32
    return %arg0, %c0_i32, %0 : i32, i32, i32
  }
  func.func @transform_1(%arg0: i32, %arg1: i32) -> (i32, i32, i32) {
    %c1_i32 = arith.constant 1 : i32
    %0 = arith.minsi %arg1, %c1_i32 : i32
    %c0_i32 = arith.constant 0 : i32
    %c0_i32_0 = arith.constant 0 : i32
    return %arg0, %c0_i32, %0 : i32, i32, i32
  }
  func.func @transform_2(%arg0: i32, %arg1: i32) -> (i32, i32, i32) {
    %c1_i32 = arith.constant 1 : i32
    %0 = arith.minsi %arg1, %c1_i32 : i32
    %c0_i32 = arith.constant 0 : i32
    %c0_i32_0 = arith.constant 0 : i32
    return %arg0, %c0_i32, %0 : i32, i32, i32
  }
  func.func @transform_3(%arg0: i32, %arg1: i32) -> (i32, i32, i32) {
    %c0_i32 = arith.constant 0 : i32
    %c0_i32_0 = arith.constant 0 : i32
    %c0_i32_1 = arith.constant 0 : i32
    return %arg0, %c0_i32, %c0_i32_0 : i32, i32, i32
  }
  func.func @transform_4(%arg0: i32, %arg1: i32) -> (i32, i32, i32) {
    %c0_i32 = arith.constant 0 : i32
    %c0_i32_0 = arith.constant 0 : i32
    %c0_i32_1 = arith.constant 0 : i32
    return %arg0, %c0_i32, %c0_i32_0 : i32, i32, i32
  }
  func.func @transform_5(%arg0: i32, %arg1: i32) -> (i32, i32, i32) {
    %c0_i32 = arith.constant 0 : i32
    %c0_i32_0 = arith.constant 0 : i32
    return %arg0, %arg1, %c0_i32 : i32, i32, i32
  }
  func.func @transform_6(%arg0: i32, %arg1: i32) -> (i32, i32, i32) {
    %c0_i32 = arith.constant 0 : i32
    %c0_i32_0 = arith.constant 0 : i32
    %c0_i32_1 = arith.constant 0 : i32
    return %arg0, %c0_i32, %c0_i32_0 : i32, i32, i32
  }
}

</mosaic_0001>

<bundles_post_ra>
// kernel: tpu_custom_call.1
= control target key start
LH: loop header
LB: loop body
LE: loop exit
PB: predicated region body
PF: predicated region fallthrough
CT: control target
= control target key end

     0   :  { %s1495_s0 = inlined_call_operand.vmem [shape: f32[2,16,200], index: 0, kind: input, shape index: {}]   ;;  %s1496_s1 = inlined_call_operand.vmem [shape: f32[2,16,200], index: 1, kind: input, shape index: {}]   ;;  %s1497_s2 = inlined_call_operand.vmem [shape: f32[2,16,200], index: 2, kind: input, shape index: {}]   ;;  %s1498_s3 = inlined_call_operand.vmem [shape: f32[2,1,200], index: 3, kind: input, shape index: {}]   ;;  %s1499_s4 = inlined_call_operand.vmem [shape: f32[2,1,200], index: 4, kind: input, shape index: {}]   ;;  %s1500_s5 = inlined_call_operand.vmem [shape: f32[2,300,128], index: 5, kind: input, shape index: {}]   ;;  %s1501_s6 = inlined_call_operand.hbm [shape: f32[2,1,128], index: 6, kind: output, shape index: {}]  }
   0x1   :  { %1507 = sst [smem:[#allocation17_spill]] %s1495_s0 }
   0x2   :  { %1508 = sst [smem:[#allocation18_spill]] %s1496_s1 }
   0x3   :  { %1509 = sst [smem:[#allocation19_spill]] %s1497_s2 }
   0x4   :  { %11 = vsyncpa [#allocation8], 0 }
   0x5   :  { %13 = vsyncpa [#allocation8 + $0x1], 0  ;;  %s1221_s21 = smov 0   ;;  %s1223_s22 = smov 0  }
   0x6   :  { %s1225_s23 = smov 0   ;;  %s1227_s24 = smov 0  }
   0x7   :  { %s1229_s25 = smov 0   ;;  %s1231_s26 = smov 0  }
   0x8   :  { %s1233_s27 = smov 0   ;;  %s1235_s28 = smov 0  }
   0x9   :  { %s1237_s29 = smov 0   ;;  %s1239_s30 = smov 0  }
   0xa LB: > { %1510 = sst [smem:[#allocation10_spill]] %s1153_s23  ;;  %s939_s7 = sadd.s32 4294967295, %s1181_s30   ;;  %s1181_s30 = sphi %s1239_s30, %s19_s30   ;;  %s1177_s29 = sphi %s1237_s29, %s1537_s29   ;;  %s1173_s28 = sphi %s1235_s28, %s1536_s28   ;;  %s1169_s27 = sphi %s1233_s27, %s1529_s27   ;;  %s1165_s26 = sphi %s1231_s26, %s1528_s26   ;;  %s1161_s25 = sphi %s1229_s25, %s1535_s25   ;;  %s1157_s24 = sphi %s1227_s24, %s1534_s24   ;;  %s1153_s23 = sphi %s1225_s23, %s1526_s23   ;;  %s1149_s22 = sphi %s1223_s22, %s1533_s22   ;;  %s1145_s21 = sphi %s1221_s21, %s1532_s21  }
   0xb   : > { %1511 = sst [smem:[#allocation11_spill]] %s1173_s28  ;;  %s940_s8 = sadd.s32 4294967294, %s1181_s30  }
   0xc   : > { %1512 = sst [smem:[#allocation12_spill]] %s1177_s29  ;;  %s28_s9 = sadd.s32 1, %s1173_s28 }
   0xd   : > { %s31_s10 = sadd.s32 1, %s1177_s29  ;;  %p29_p0 = scmp.ge.s32.totalorder %s28_s9, 3 }
   0xe   : > { %p35_p1 = scmp.lt.s32.totalorder %s1173_s28, 1  ;;  %s44_s11 = sadd.s32 1, %s1161_s25 }
   0xf   : > { %p51_p2 = scmp.ne.s32.totalorder %s1161_s25, %s1157_s24  ;;  %s1539_s9 = smov (%p29_p0, %s28_s9), 0 }
  0x10   : > { %1513 = sst [smem:[#allocation13_spill]] %s1539_s9  ;;  %s1541_s10 = smov (!%p29_p0, %s31_s10), %s1177_s29 }
  0x11   : > { %s1283_s12 = scalar_select %p35_p1, %s1173_s28, 1 }
  0x12   : > { %p33_p3 = scmp.ge.s32.totalorder %s1541_s10, 2  ;;  %p37_p4 = scmp.lt.s32.totalorder %s1539_s9, 1 }
  0x13   : > { %p52_p5 = scmp.eq.s32.totalorder %s1181_s30, 0  ;;  %s214_s13 = sadd.s32 1, %s1153_s23 }
  0x14   : > { %s1543_s10 = smov (%p33_p3, %s1541_s10), 0  ;;  %p224_p8 = scmp.ne.s32.totalorder %s1153_s23, %s1149_s22 }
  0x15   : > { %1514 = sst [smem:[#allocation14_spill]] %s1543_s10  ;;  %s39_s15 = ssub.s32 %s1177_s29, %s1543_s10 }
  0x16   : > { %s38_s14 = scalar_select %p37_p4, %s1539_s9, 1 }
  0x17   : > { %p1293_p6 = por %p52_p5, %p51_p2  ;;  %p212_p7 = scmp.eq.s32.totalorder %s39_s15, 0 }
  0x18   : > { %s40_s17 = ssub.s32 %s1283_s12, %s38_s14  ;;  %p225_p10 = scmp.eq.s32.totalorder %s939_s7, 5 }
  0x19   : > { %s41_s18 = sor.u32 %s40_s17, %s39_s15  ;;  %p230_p12 = scmp.ne.s32.totalorder %s1149_s22, %s1145_s21 }
  0x1a   : > { %p42_p9 = scmp.eq.s32.totalorder %s41_s18, 0  ;;  %p1306_p11 = por %p225_p10, %p224_p8 }
  0x1b   : > { %s1301_s19 = scalar_select %p212_p7, %s1153_s23, %s214_s13  }
  0x1c   : > { %s1304_s20 = scalar_select %p42_p9, %s1161_s25, %s44_s11  }
  0x1d   : > { %1516 = sst [smem:[#allocation15_spill]] %s1301_s19  ;;  %p231_p13 = scmp.eq.s32.totalorder %s940_s8, 5 }
  0x1e   : > { %1517 = sst [smem:[#allocation16_spill]] %s1304_s20  ;;  %p942_p1 = scmp.ge.s32.totalorder %s1181_s30, 6 }
  0x1f   : > { %p1312_p0 = por %p231_p13, %p230_p12 }
  0x20   : > { %247 = sbr.rel (%p942_p1) target bundleno = 72 (0x48), region = 16 }
  0x27   : > { %250 = sbr.rel (!%p1293_p6) target bundleno = 50 (0x32), region = 20  ;;  %s252_s7 = sand.u32 (%p1293_p6), 1, %s1161_s25  }
  0x28   : > { %s944_s11 = sshll.u32 (%p1293_p6), %s1177_s29, 2  ;;  %s943_s13 = sshll.u32 (%p1293_p6), %s252_s7, 4 }
  0x29   : > { %s258_s14 = sadd.s32 (%p1293_p6), %s944_s11, %s1283_s12  ;;  %s1520_s0 = sld [smem:[#allocation17_spill]] (%p1293_p6) }
  0x2a   : > { %s945_s15 = sshll.u32 (%p1293_p6), %s258_s14, 3  ;;  %s254_s9 = scalar_lea.vmem (%p1293_p6), [#allocation4], %s943_s13 }
  0x2f   : > { %s260_s18 = scalar_lea.vmem %s1520_s0, %s945_s15 }
  0x30   : > { %v290_v0 = vld [vmem:[%s260_s18] sm:$0xff]  ;;  %v292_v1 = vld [vmem:[%s260_s18 + $0x10] sm:$0xff] }
  0x31   : > { %291 = vst [vmem:[%s254_s9] sm:$0xff] %v290_v0  ;;  %293 = vst [vmem:[%s254_s9 + $0x8] sm:$0xff] %v292_v1 }
  0x32 PF: > { %299 = sbr.rel (!%p1293_p6) target bundleno = 61 (0x3d), region = 58  ;;  %s301_s20 = sand.u32 (%p1293_p6), 1, %s1161_s25  }
  0x33   : > { %s947_s7 = sshll.u32 (%p1293_p6), %s1177_s29, 2  ;;  %s946_s11 = sshll.u32 (%p1293_p6), %s301_s20, 4 }
  0x34   : > { %s307_s14 = sadd.s32 (%p1293_p6), %s947_s7, %s1283_s12  ;;  %s1521_s1 = sld [smem:[#allocation18_spill]] (%p1293_p6) }
  0x35   : > { %s948_s19 = sshll.u32 (%p1293_p6), %s307_s14, 3  ;;  %s303_s13 = scalar_lea.vmem (%p1293_p6), [#allocation5], %s946_s11 }
  0x3a   : > { %s309_s15 = scalar_lea.vmem %s1521_s1, %s948_s19 }
  0x3b   : > { %v339_v2 = vld [vmem:[%s309_s15] sm:$0xff]  ;;  %v341_v3 = vld [vmem:[%s309_s15 + $0x10] sm:$0xff] }
  0x3c   : > { %340 = vst [vmem:[%s303_s13] sm:$0xff] %v339_v2  ;;  %342 = vst [vmem:[%s303_s13 + $0x8] sm:$0xff] %v341_v3 }
  0x3d PF: > { %348 = sbr.rel (!%p1293_p6) target bundleno = 72 (0x48), region = 96  ;;  %s350_s9 = sand.u32 (%p1293_p6), 1, %s1161_s25  }
  0x3e   : > { %s950_s20 = sshll.u32 (%p1293_p6), %s1177_s29, 2  ;;  %s949_s8 = sshll.u32 (%p1293_p6), %s350_s9, 4 }
  0x3f   : > { %s356_s18 = sadd.s32 (%p1293_p6), %s950_s20, %s1283_s12  ;;  %s1522_s2 = sld [smem:[#allocation19_spill]] (%p1293_p6) }
  0x40   : > { %s951_s7 = sshll.u32 (%p1293_p6), %s356_s18, 3  ;;  %s352_s11 = scalar_lea.vmem (%p1293_p6), [#allocation6], %s949_s8 }
  0x45   : > { %s358_s19 = scalar_lea.vmem %s1522_s2, %s951_s7 }
  0x46   : > { %v388_v4 = vld [vmem:[%s358_s19] sm:$0xff]  ;;  %v390_v5 = vld [vmem:[%s358_s19 + $0x10] sm:$0xff] }
  0x47   : > { %389 = vst [vmem:[%s352_s11] sm:$0xff] %v388_v4  ;;  %391 = vst [vmem:[%s352_s11 + $0x8] sm:$0xff] %v390_v5 }
  0x48 PF: > { %p952_p2 = scmp.ge.s32.totalorder %s1181_s30, 1  ;;  %p431_p3 = scmp.lt.s32.totalorder %s1181_s30, 7 }
  0x4a   : > { %p432_p4 = pnand %p952_p2, %p431_p3 }
  0x4b   : > { %s438_s12 = sand.u32 (!%p432_p4), 1, %s1157_s24   ;;  %p515_p5 = scmp.lt.s32.totalorder (!%p432_p4), %s1169_s27, 1 }
  0x4c   : > { %435 = sbr.rel (%p432_p4) target bundleno = 409 (0x199), region = 146  ;;  %s1345_s17 = sshll.u32 (!%p432_p4), %s438_s12, 4 }
  0x4d   : > { %s958_s15 = sshll.u32 (!%p432_p4), %s1165_s26, 4  ;;  %s440_s1 = scalar_lea.vmem (!%p432_p4), [#allocation4], %s1345_s17 }
  0x4e   : > { %p530_p6 = scmp.lt.s32.totalorder (!%p432_p4), %s958_s15, 37  ;;  %s454_s2 = scalar_lea.vmem (!%p432_p4), [#allocation6], %s1345_s17 }
  0x4f   : > { %s1523_s29 = sand.u32 (!%p432_p4), 1, %s1149_s22   ;;  %p960_p7 = scmp.ne.s32.totalorder (!%p432_p4), %s1165_s26, 0 }
  0x50   : > { %s1370_s8 = scalar_lea.vmem (!%p432_p4), [#allocation7], %s1523_s29 }
  0x53   : > { %s516_s13 = scalar_select %p515_p5, %s1169_s27, 1 }
  0x54   : > { %s1545_s15 = smov (!%p530_p6, %s958_s15), 37  ;;  %544 = sbr.rel (%p960_p7) target bundleno = 91 (0x5b), region = 162 }
  0x55   : > { %s956_s9 = sshll.u32 %s516_s13, 1  ;;  %s969_s20 = smul.u32 38, %s516_s13  ;;  %v1183_v6 = vmov (!%p960_p7), 0.0   ;;  %v1184_v7 = vmov (!%p960_p7), -inf  }
  0x56   : > { %s1353_s7 = scalar_lea.vmem %s1498_s3, %s956_s9  ;;  %s1358_s23 = scalar_lea.vmem %s1499_s4, %s956_s9  ;;  %545 = vst [vmem:[#allocation2] sm:$0xff] (!%p960_p7), %v1183_v6  ;;  %546 = vst [vmem:[#allocation3] sm:$0xff] (!%p960_p7), %v1184_v7 }
  0x57   : > { %s533_s19 = sadd.s32 %s969_s20, %s1545_s15  ;;  %s447_s13 = scalar_lea.vmem [#allocation5], %s1345_s17 }
  0x58   : > { %s959_s11 = sshll.u32 %s533_s19, 3 }
  0x59   : > { %s1363_s0 = scalar_lea.vmem %s1500_s5, %s959_s11 }
  0x5b PF: > { %p961_p8 = scmp.ge.s32.totalorder %s1165_s26, 2 }
  0x5c   : > { %v551_v8 = vld [vmem:[%s440_s1] sm:$0xff] (!%p961_p8)  ;;  %v552_v9 = vld [vmem:[%s440_s1 + $0x8] sm:$0xff] (!%p961_p8)  ;;  %v567_v11 = vlaneseq (!%p961_p8)  ;;  %s962_s16 = sshll.u32 (!%p961_p8), %s1165_s26, 7 }
  0x5d   : > { %550 = sbr.rel (%p961_p8) target bundleno = 107 (0x6b), region = 166  ;;  %v553_v10 = vld [vmem:[%s447_s13] sm:$0xff] (!%p961_p8)  ;;  %v554_v12 = vld [vmem:[%s447_s13 + $0x8] sm:$0xff] (!%p961_p8)  ;;  %v570_v15 = vstv (!%p961_p8), %s962_s16 }
  0x5e   : > { %v555_v13 = vld [vmem:[%s454_s2] sm:$0xff] (!%p961_p8)  ;;  %v556_v14 = vld [vmem:[%s454_s2 + $0x8] sm:$0xff] (!%p961_p8)  ;;  %v568_v20 = vand.u32 (!%p961_p8), 127, %v567_v11 }
  0x5f   : > { %v557_v16 = vsub.f32 (!%p961_p8), %v551_v8, %v555_v13  ;;  %v558_v17 = vsub.f32 (!%p961_p8), %v552_v9, %v556_v14  ;;  %v559_v18 = vsub.f32 (!%p961_p8), %v553_v10, %v555_v13  ;;  %v560_v19 = vsub.f32 (!%p961_p8), %v554_v12, %v556_v14  ;;  %v576_v30 = vld [vmem:[#allocation2] sm:$0xff] (!%p961_p8) }
  0x60   : > { %v571_v25 = vadd.s32 (!%p961_p8), %v570_v15, %v568_v20 }
  0x61   : > { %v561_v21 = vmul.f32 (!%p961_p8), %v557_v16, %v557_v16  ;;  %v562_v22 = vmul.f32 (!%p961_p8), %v558_v17, %v558_v17  ;;  %v563_v23 = vmul.f32 (!%p961_p8), %v559_v18, %v559_v18  ;;  %v564_v24 = vmul.f32 (!%p961_p8), %v560_v19, %v560_v19 }
  0x62   : > { %vm572_vm0 = vcmp.lt.s32.totalorder (!%p961_p8), %v571_v25, 200 }
  0x63   : > { %v565_v26 = vadd.f32 (!%p961_p8), %v563_v23, %v561_v21  ;;  %v566_v27 = vadd.f32 (!%p961_p8), %v564_v24, %v562_v22 }
  0x65   : > { %v573_v28 = vsel %vm572_vm0, %v565_v26, 0.0  ;;  %v574_v29 = vsel %vm572_vm0, %v566_v27, 0.0 }
  0x66   : > { %v575_v31 = vadd.f32 %v574_v29, %v573_v28 }
  0x68   : > { %v577_v32 = vadd.f32 %v576_v30, %v575_v31 }
  0x6a   : > { %578 = vst [vmem:[#allocation2] sm:$0xff] %v577_v32 }
  0x6b PF: > { %v595_v33 = vlaneseq  ;;  %s963_s1 = sshll.u32 %s1165_s26, 7  ;;  %v579_v60 = vld [vmem:[%s1363_s0] sm:$0xff]  ;;  %v580_v1 = vld [vmem:[%s1363_s0 + $0x8] sm:$0xff]  ;;  %v581_v2 = vld [vmem:[%s1363_s0 + $0x10] sm:$0xff]  ;;  %p964_p9 = scmp.ne.s32.totalorder %s1165_s26, 2 }
  0x6c   : > { %v613_v35 = vstv %s963_s1  ;;  %v582_v3 = vld [vmem:[%s1363_s0 + $0x18] sm:$0xff]  ;;  %v583_v7 = vld [vmem:[%s1363_s0 + $0x20] sm:$0xff]  ;;  %v584_v8 = vld [vmem:[%s1363_s0 + $0x28] sm:$0xff] }
  0x6d   : > { %v1377_v34 = vshrl.u32 %v595_v33, 7  ;;  %v585_v9 = vld [vmem:[%s1363_s0 + $0x30] sm:$0xff]  ;;  %v586_v10 = vld [vmem:[%s1363_s0 + $0x38] sm:$0xff]  ;;  %v587_v11 = vld [vmem:[%s1363_s0 + $0x40] sm:$0xff] }
  0x6e   : > { %v588_v12 = vld [vmem:[%s1363_s0 + $0x48] sm:$0xff]  ;;  %v589_v13 = vld [vmem:[%s1363_s0 + $0x50] sm:$0xff]  ;;  %v590_v14 = vld [vmem:[%s1363_s0 + $0x58] sm:$0xff] }
  0x6f   : > { %v597_v36 = vadd.s32 8, %v1377_v34  ;;  %v598_v37 = vadd.s32 16, %v1377_v34  ;;  %v599_v38 = vadd.s32 24, %v1377_v34  ;;  %v600_v39 = vadd.s32 32, %v1377_v34  ;;  %v591_v19 = vld [vmem:[%s1363_s0 + $0x60] sm:$0xff]  ;;  %v592_v20 = vld [vmem:[%s1363_s0 + $0x68] sm:$0xff] }
  0x70   : > { %v601_v40 = vadd.s32 40, %v1377_v34  ;;  %v602_v41 = vadd.s32 48, %v1377_v34  ;;  %v603_v42 = vadd.s32 56, %v1377_v34  ;;  %v604_v43 = vadd.s32 64, %v1377_v34  ;;  %v593_v25 = vld [vmem:[%s1363_s0 + $0x70] sm:$0xff]  ;;  %v594_v26 = vld [vmem:[%s1363_s0 + $0x78] sm:$0xff] }
  0x71   : > { %v605_v44 = vadd.s32 72, %v1377_v34  ;;  %v606_v45 = vadd.s32 80, %v1377_v34  ;;  %v607_v46 = vadd.s32 88, %v1377_v34  ;;  %v608_v47 = vadd.s32 96, %v1377_v34 }
  0x72   : > { %v609_v48 = vadd.s32 104, %v1377_v34  ;;  %v610_v49 = vadd.s32 112, %v1377_v34  ;;  %v611_v50 = vadd.s32 120, %v1377_v34  ;;  %v614_v51 = vadd.s32 %v613_v35, %v1377_v34 }
  0x73   : > { %v615_v52 = vadd.s32 %v613_v35, %v597_v36  ;;  %v616_v53 = vadd.s32 %v613_v35, %v598_v37  ;;  %v617_v54 = vadd.s32 %v613_v35, %v599_v38  ;;  %v618_v55 = vadd.s32 %v613_v35, %v600_v39 }
  0x74   : > { %v619_v56 = vadd.s32 %v613_v35, %v601_v40  ;;  %v620_v57 = vadd.s32 %v613_v35, %v602_v41  ;;  %v621_v58 = vadd.s32 %v613_v35, %v603_v42  ;;  %v622_v59 = vadd.s32 %v613_v35, %v604_v43 }
  0x75   : > { %v623_v61 = vadd.s32 %v613_v35, %v605_v44  ;;  %v624_v62 = vadd.s32 %v613_v35, %v606_v45  ;;  %v625_v63 = vadd.s32 %v613_v35, %v607_v46  ;;  %v626_v0 = vadd.s32 %v613_v35, %v608_v47 }
  0x76   : > { %v627_v4 = vadd.s32 %v613_v35, %v609_v48  ;;  %v628_v5 = vadd.s32 %v613_v35, %v610_v49  ;;  %v629_v6 = vadd.s32 %v613_v35, %v611_v50  ;;  %vm630_vm1 = vcmp.lt.s32.totalorder %v614_v51, 300  ;;  %v677_v51 = vld [vmem:[#allocation3] sm:$0xff] }
  0x77   : > { %vm631_vm2 = vcmp.lt.s32.totalorder %v615_v52, 300  ;;  %vm632_vm3 = vcmp.lt.s32.totalorder %v616_v53, 300  ;;  %vm633_vm4 = vcmp.lt.s32.totalorder %v617_v54, 300  ;;  %vm634_vm5 = vcmp.lt.s32.totalorder %v618_v55, 300  ;;  %v684_v54 = vld [vmem:[#allocation2] sm:$0xff] (!%p964_p9) }
  0x78   : > { %vm635_vm6 = vcmp.lt.s32.totalorder %v619_v56, 300  ;;  %vm636_vm7 = vcmp.lt.s32.totalorder %v620_v57, 300  ;;  %vm637_vm8 = vcmp.lt.s32.totalorder %v621_v58, 300  ;;  %vm638_vm9 = vcmp.lt.s32.totalorder %v622_v59, 300  ;;  %v694_v56 = vld [vmem:[%s1353_s7] sm:$0x3] (!%p964_p9)  ;;  %685 = vadd.xlane.f32.xlu0 (!%p964_p9), %v684_v54 }
  0x79   : > { %vm639_vm10 = vcmp.lt.s32.totalorder %v623_v61, 300  ;;  %vm640_vm11 = vcmp.lt.s32.totalorder %v624_v62, 300  ;;  %vm641_vm12 = vcmp.lt.s32.totalorder %v625_v63, 300  ;;  %vm642_vm13 = vcmp.lt.s32.totalorder %v626_v0, 300 }
  0x7a   : > { %v646_v15 = vsel %vm630_vm1, %v579_v60, -inf  ;;  %v647_v16 = vsel %vm631_vm2, %v580_v1, -inf  ;;  %v648_v17 = vsel %vm632_vm3, %v581_v2, -inf  ;;  %v650_v18 = vsel %vm634_vm5, %v583_v7, -inf  ;;  %v695_v7 = vld [vmem:[%s1358_s23] sm:$0x3] (!%p964_p9) }
  0x7b   : > { %v649_v21 = vsel %vm633_vm4, %v582_v3, -inf  ;;  %v651_v22 = vsel %vm635_vm6, %v584_v8, -inf  ;;  %v652_v23 = vsel %vm636_vm7, %v585_v9, -inf  ;;  %v653_v24 = vsel %vm637_vm8, %v586_v10, -inf }
  0x7c   : > { %vm643_vm14 = vcmp.lt.s32.totalorder %v627_v4, 300  ;;  %vm644_vm15 = vcmp.lt.s32.totalorder %v628_v5, 300  ;;  %vm645_vm0 = vcmp.lt.s32.totalorder %v629_v6, 300  ;;  %v654_v27 = vsel %vm638_vm9, %v587_v11, -inf }
  0x7d   : > { %v655_v28 = vsel %vm639_vm10, %v588_v12, -inf  ;;  %v656_v29 = vsel %vm640_vm11, %v589_v13, -inf  ;;  %v657_v30 = vsel %vm641_vm12, %v590_v14, -inf  ;;  %v662_v31 = vmax.f32 %v646_v15, %v650_v18 }
  0x7e   : > { %v658_v32 = vsel %vm642_vm13, %v591_v19, -inf  ;;  %v663_v35 = vmax.f32 %v647_v16, %v651_v22  ;;  %v664_v36 = vmax.f32 %v648_v17, %v652_v23  ;;  %v665_v37 = vmax.f32 %v649_v21, %v653_v24 }
  0x7f   : > { %v659_v38 = vsel %vm643_vm14, %v592_v20, -inf  ;;  %v660_v39 = vsel %vm644_vm15, %v593_v25, -inf  ;;  %v661_v40 = vsel %vm645_vm0, %v594_v26, -inf  ;;  %v666_v41 = vmax.f32 %v662_v31, %v654_v27 }
  0x80   : > { %v667_v42 = vmax.f32 %v663_v35, %v655_v28  ;;  %v668_v43 = vmax.f32 %v664_v36, %v656_v29  ;;  %v669_v44 = vmax.f32 %v665_v37, %v657_v30  ;;  %v699_v58 = vand.u32 (!%p964_p9), 2147483647, %v694_v56 }
  0x81   : > { %v670_v45 = vmax.f32 %v666_v41, %v658_v32  ;;  %vm725_vm1 = vcmask (!%p964_p9), 1040384   ;;  %v696_v9 = vmax.f32 (!%p964_p9), %v694_v56, 0.0  ;;  %v697_v10 = vmul.f32 (!%p964_p9), %v695_v7, %v694_v56 }
  0x82   : > { %v671_v46 = vmax.f32 %v667_v42, %v659_v38  ;;  %v672_v47 = vmax.f32 %v668_v43, %v660_v39  ;;  %v673_v48 = vmax.f32 %v669_v44, %v661_v40  ;;  %v700_v60 = vsub.f32 (!%p964_p9), 0.0, %v699_v58 }
  0x83   : > { %v698_v14 = vsub.f32 (!%p964_p9), %v696_v9, %v697_v10  ;;  %v717_v16 = vsub.s32 (!%p964_p9), 0, %v1377_v34  ;;  %v721_v17 = vsub.s32 (!%p964_p9), 1, %v1377_v34  ;;  %vm727_vm3 = vcmask (!%p964_p9), 581632  }
  0x84   : > { %v674_v49 = vmax.f32 %v670_v45, %v671_v46  ;;  %v675_v50 = vmax.f32 %v672_v47, %v673_v48  ;;  %683 = sbr.rel (%p964_p9) target bundleno = 384 (0x180), region = 170  ;;  %v701_v62 = vmul.f32 (!%p964_p9), 1.442695, %v700_v60  ;;  %v757_v47 = vand.u32 (!%p964_p9), 127, %v595_v33 }
  0x86   : > { %v676_v52 = vmax.f32 %v674_v49, %v675_v50  ;;  %1065 = vpow2.f32 (!%p964_p9), %v701_v62  ;;  %vm758_vm4 = vcmp.eq.s32.totalorder (!%p964_p9), %v757_v47, 0  ;;  %vm761_vm5 = vcmp.eq.s32.totalorder (!%p964_p9), %v757_v47, 1 }
  0x87   : > { %vm765_vm6 = vcmp.eq.s32.totalorder (!%p964_p9), %v757_v47, 2 }
  0x88   : > { %v678_v53 = vmax.f32 %v677_v51, %v676_v52 }
  0x8a   : > { %679 = vst [vmem:[#allocation3] sm:$0xff] %v678_v53 }
  0x90   : > { %v1066_v3 = vpop.eup %1065 }
  0x91   : > { %v739_v55 = vld [vmem:[#allocation3] sm:$0xff]  ;;  %v703_v4 = vadd.f32 1.0, %v1066_v3 }
  0x92   : > { %v740_v57 = vrot.slane %v739_v55, 4 }
  0x93   : > { %vm704_vm2 = vcmp.eq.f32.partialorder %v703_v4, 1.0  ;;  %v965_v5 = vadd.f32 -1.0, %v703_v4  ;;  %1067 = vlog2.f32 %v703_v4 }
  0x94   : > { %v741_v59 = vmax.f32 %v739_v55, %v740_v57 }
  0x95   : > { %v706_v6 = vsel %vm704_vm2, 1.0, %v965_v5 }
  0x96   : > { %v742_v61 = vrot.slane %v741_v59, 2  ;;  %1069 = vrcp.f32 %v706_v6 }
  0x98   : > { %v743_v63 = vmax.f32 %v741_v59, %v742_v61 }
  0x9a   : > { %v744_v0 = vrot.slane %v743_v63, 1 }
  0x9c   : > { %v745_v1 = vmax.f32 %v743_v63, %v744_v0 }
  0x9d   : > { %v1068_v8 = vpop.eup %1067 }
  0x9e   : > { %v746_v2 = vsel %vm725_vm1, %v745_v1, 0.0  ;;  %v708_v11 = vmul.f32 0.6931472, %v1068_v8 }
  0x9f   : > { %747 = vadd.xlane.f32.xlu1 %v746_v2 }
  0xa0   : > { %v1070_v12 = vpop.eup %1069 }
  0xa1   : > { %v710_v13 = vmul.f32 %v1070_v12, %v1066_v3 }
  0xa3   : > { %v711_v15 = vmul.f32 %v710_v13, %v708_v11 }
  0xa5   : > { %v712_v18 = vsel %vm704_vm2, %v1066_v3, %v711_v15 }
  0xa6   : > { %v713_v19 = vadd.f32 %v712_v18, %v698_v14 }
  0xa8   : > { %v718_v20 = vrot.slane %v713_v19, %v717_v16  ;;  %v722_v21 = vrot.slane %v713_v19, %v721_v17 }
  0xaa   : > { %v726_v22 = vsel %vm725_vm1, %v718_v20, 0.0  ;;  %v728_v23 = vsel %vm727_vm3, %v722_v21, 0.0 }
  0xab   : > { %v729_v24 = vadd.f32 %v728_v23, %v726_v22 }
  0xad   : > { %730 = vadd.xlane.f32.xlu0 %v729_v24 }
 0x105   : > { %v686_v25 = vpop.xlane.xlu0 %685 }
 0x106   : > { %v687_v26 = vrot.slane %v686_v25, 4 }
 0x108   : > { %v688_v27 = vadd.f32 %v687_v26, %v686_v25 }
 0x10a   : > { %v689_v28 = vrot.slane %v688_v27, 2 }
 0x10c   : > { %v690_v29 = vadd.f32 %v689_v28, %v688_v27 }
 0x10e   : > { %v691_v30 = vrot.slane %v690_v29, 1 }
 0x110   : > { %v692_v31 = vadd.f32 %v691_v30, %v690_v29 }
 0x112   : > { %970 = vpush %v692_v31 }
 0x12c   : > { %v748_v34 = vpop.xlane.xlu1 %747 }
 0x12d   : > { %v749_v32 = vrot.slane %v748_v34, 4 }
 0x12f   : > { %v750_v35 = vadd.f32 %v749_v32, %v748_v34 }
 0x131   : > { %v751_v36 = vrot.slane %v750_v35, 2 }
 0x133   : > { %v752_v40 = vadd.f32 %v751_v36, %v750_v35 }
 0x135   : > { %v753_v43 = vrot.slane %v752_v40, 1 }
 0x137   : > { %v754_v46 = vadd.f32 %v753_v43, %v752_v40 }
 0x13a   : > { %v731_v37 = vpop.xlane.xlu0 %730 }
 0x13b   : > { %v732_v38 = vrot.slane %v731_v37, 4 }
 0x13d   : > { %v733_v39 = vadd.f32 %v732_v38, %v731_v37 }
 0x13f   : > { %v734_v41 = vrot.slane %v733_v39, 2 }
 0x141   : > { %v735_v42 = vadd.f32 %v734_v41, %v733_v39 }
 0x143   : > { %v736_v44 = vrot.slane %v735_v42, 1  ;;  %s971_s0 = spop %970 }
 0x144   : > { %v759_v48 = vstv %s971_s0 }
 0x145   : > { %v737_v45 = vadd.f32 %v736_v44, %v735_v42  ;;  %v760_v50 = vsel %vm758_vm4, %v759_v48, 0.0 }
 0x147   : > { %972 = vpush %v737_v45 }
 0x148   : > { %974 = vpush %v754_v46 }
 0x178   : > { %s973_s2 = spop %972 }
 0x179   : > { %v762_v49 = vstv %s973_s2  ;;  %s975_s26 = spop %974 }
 0x17a   : > { %v763_v51 = vsel %vm761_vm5, %v762_v49, 0.0  ;;  %v766_v52 = vstv %s975_s26 }
 0x17b   : > { %v764_v53 = vadd.f32 %v763_v51, %v760_v50  ;;  %v767_v54 = vsel %vm765_vm6, %v766_v52, 0.0 }
 0x17d   : > { %v768_v55 = vadd.f32 %v767_v54, %v764_v53 }
 0x17f   : > { %769 = vst [vmem:[%s1370_s8] sm:$0x1] %v768_v55 }
 0x180 PF: > { %s966_s29 = sshll.u32 %s1169_s27, 4  ;;  %s783_s20 = sshll.u32 %s1370_s8, 4  ;;  %s784_s20 = int_to_ptr.vmem [resolvable:$true] %s783_s20 }
 0x181   : > { %s1439_s9 = scalar_lea.hbm %s1501_s6, %s966_s29  ;;  %s1524_s18 = sand.u32 1, %s1149_s22  }
 0x182   : > { %s771_s7 = scalar_lea.sflag [#allocation8], %s1524_s18  ;;  %s1071_s14 = scalar_lea.vmem %s784_s20, 16 }
 0x183   : > { %p1072_p10 = scmp.ne.s32.totalorder %s784_s20, %s1071_s14  ;;  %s1185_s24 = smov [#allocation7]  }
 0x184   : > { %s1075_s23 = sshll.u32 %s1185_s24, 4  ;;  %s1076_s23 = int_to_ptr.vmem [resolvable:$false] %s1075_s23 }
 0x185   : > { %p1073_p12 = pnand %p1072_p10, %p1306_p11  ;;  %s1077_s19 = scalar_lea.vmem %s1076_s23, 32 }
 0x186   : > { %p1078_p1 = scmp.lt.s32.totalorder %s784_s20, %s1076_s23  ;;  %p1079_p2 = scmp.lt.s32.totalorder %s1077_s19, %s1071_s14 }
 0x187   : > { %p1074_p13 = pneg %p1073_p12 }
 0x188   : > { %p1080_p3 = por %p1079_p2, %p1078_p1 }
 0x18a   : > { %p1081_p4 = pnand %p1080_p3, %p1074_p13 }
 0x18c   : > { %1084 = shalt.err (!%p1081_p4)
}
 0x18d   : > { %s1085_s27 = scalar_lea.hbm %s1439_s9, 16  ;;  %s1089_s13 = scalar_lea.hbm %s1501_s6, 32 }
 0x18e   : > { %p1086_p5 = scmp.ne.s32.totalorder %s1439_s9, %s1085_s27  ;;  %p1090_p8 = scmp.lt.u32.totalorder %s1439_s9, %s1501_s6 }
 0x18f   : > { %p1091_p9 = scmp.lt.u32.totalorder %s1089_s13, %s1085_s27  ;;  %p1093_p12 = scmp.lt.u32.totalorder %s1085_s27, %s1439_s9 }
 0x190   : > { %p1087_p6 = pnand %p1086_p5, %p1306_p11 }
 0x191   : > { %p1092_p10 = por %p1091_p9, %p1090_p8 }
 0x192   : > { %p1088_p7 = pneg %p1087_p6 }
 0x193   : > { %p1094_p13 = por %p1093_p12, %p1092_p10 }
 0x195   : > { %p1095_p1 = pnand %p1094_p13, %p1088_p7 }
 0x197   : > { %1098 = shalt.err (!%p1095_p1)
}
 0x198   : > { %976 = dma.vmem_to_hbm [thread:$0]  (%p1306_p11), %s784_s20, 16, %s1439_s9, %s771_s7  }
 0x199 PF: > { %p982_p2 = scmp.ge.s32.totalorder %s1181_s30, 2  ;;  %s795_s1 = sand.u32 1, %s1145_s21  }
 0x19a   : > { %s796_s0 = scalar_lea.sflag [#allocation8], %s795_s1 }
 0x19b   : > { %p979_p3 = pnand %p982_p2, %p1312_p0 }
 0x19d   : > { %1140 = dma.done.wait (!%p979_p3), %s796_s0, 16  }
 0x19e   : > { %1142 = vsyncadd (!%p979_p3), %s796_s0, 4294967280  ;;  %s19_s30 = sadd.s32 1, %s1181_s30   ;;  %s1525_s2 = sld [smem:[#allocation10_spill]] }
 0x19f   : > { %p16_p4 = scmp.ge.s32.totalorder %s19_s30, 8   ;;  %s1526_s23 = sld [smem:[#allocation15_spill]] }
 0x1a0   : > { %s1527_s28 = sld [smem:[#allocation16_spill]]  ;;  %s1528_s26 = sld [smem:[#allocation11_spill]] }
 0x1a1   : > { %s1529_s27 = sld [smem:[#allocation12_spill]]  ;;  %s1530_s29 = sld [smem:[#allocation13_spill]] }
 0x1a2   : > { %s1531_s17 = sld [smem:[#allocation14_spill]]  ;;  %s1532_s21 = smov %s1149_s22 }
 0x1a3   : > { %s1534_s24 = smov %s1161_s25  ;;  %18 = sbr.rel (!%p16_p4) target bundleno = 10 (0xa), region = 235 }
 0x1a4   : > { %s1533_s22 = smov %s1525_s2 }
 0x1a6   : > { %s1535_s25 = smov %s1527_s28 }
 0x1a7   : > { %s1536_s28 = smov %s1530_s29 }
 0x1a8   : > { %s1537_s29 = smov %s1531_s17 }
 0x1aa   :  { %800 = vsyncpa [#allocation8], 1 }
 0x1ab   :  { %802 = vsyncpa [#allocation8 + $0x1], 1 }

</bundles_post_ra>
